<compile_context>
chip_gen: v5e
topology: v5e:2x2
jax: 0.10.0
libtpu: 0.0.40
codegen_flags: <defaults>
</compile_context>

<pallas_src>
from functools import partial

import jax
import jax.numpy as jnp
from jax.experimental import pallas as pl
from jax.experimental.pallas import tpu as pltpu


# ------------------------------- Pallas kernel ------------------------------ #

def _make_mlp_kernel(n_layers, compute_dtype):
    """Fused MLP body: x tile -> [dot + bias (+ ReLU)] * n_layers -> out tile."""

    def kernel(*refs):
        x_ref, o_ref = refs[0], refs[-1]
        wb = refs[1:-1]                       # interleaved (w0, b0, w1, b1, ...)
        h = x_ref[...].astype(compute_dtype)  # (tm, in_dim), cast f32->bf16 in VMEM
        for k in range(n_layers):
            w_ref, b_ref = wb[2 * k], wb[2 * k + 1]
            acc = jnp.dot(h, w_ref[...],      # MXU, f32 accumulation
                          preferred_element_type=jnp.float32)
            acc = acc + b_ref[...]            # bias kept f32, (1, Dout) broadcast
            if k < n_layers - 1:
                h = jnp.maximum(acc, 0.0).astype(compute_dtype)   # ReLU
            else:
                o_ref[...] = acc.astype(o_ref.dtype)              # bf16 store

    return kernel


# ------------------------------ helpers / wrapper ---------------------------- #

def _round_up(v, m):
    return (v + m - 1) // m * m


def _vmem_limit_bytes():
    """Generation-dependent scoped-VMEM limit.

    v5e/v6e have 128 MiB physical VMEM (use 96 MiB); v7x only 64 MiB physical /
    32 MiB scoped default, so fall back to the v7x-safe 32 MiB for it and for
    unknown chips.
    """
    try:
        kind = jax.devices()[0].device_kind.lower()
    except Exception:
        kind = ""
    if "v5" in kind or "v6" in kind:
        return 96 * 1024 * 1024
    return 32 * 1024 * 1024


def _choose_tm(M, tm_max):
    """Row-tile size: multiple of 16 (bf16 sublane packing), <= tm_max, and
    roughly cdiv(M, 2) so the 'parallel' row axis has >= 2 grid steps (keeps
    both v7x TensorCores busy; neutral on single-TC v5e/v6e)."""
    tm = _round_up(pl.cdiv(M, 2), 16)
    tm = min(tm, tm_max)
    tm = min(tm, _round_up(M, 16))
    return max(tm, 16)


def pad_params_for_pallas(weights, biases, compute_dtype=jnp.bfloat16):
    """Pad feature dims to 128 lanes and cast to the MXU dtype, ONCE per model.

    The first weight keeps its unpadded K (contraction dim) so x can be fed to
    the kernel without feature padding.  All padded entries are zero, so the
    padded lanes stay exactly zero through the whole Linear/ReLU chain.
    """
    pw, pb = [], []
    for k, (w, b) in enumerate(zip(weights, biases)):
        din, dout = w.shape
        kin = din if k == 0 else _round_up(din, 128)
        kout = _round_up(dout, 128)
        wp = jnp.pad(w, ((0, kin - din), (0, kout - dout))).astype(compute_dtype)
        bp = jnp.pad(b, (0, kout - dout)).reshape(1, kout).astype(jnp.float32)
        pw.append(wp)
        pb.append(bp)
    return tuple(pw), tuple(pb)


def regularnet_forward(x, weights, biases, padded_weights, padded_biases, *,
                       squeeze_out=False, compute_dtype=jnp.bfloat16,
                       tm_max=1024, min_pallas_rows=512):
    """Forward pass matching PyTorch RegularNet.forward (nonlin = ReLU).

    x: (..., input_dim) float32.
    weights[k]: (d_in_k, d_out_k) float32 (transposed vs. nn.Linear.weight).
    biases[k]:  (d_out_k,) float32.
    padded_weights / padded_biases: output of pad_params_for_pallas (built once).
    """
    orig_dtype = x.dtype
    n_layers = len(weights)
    lead = x.shape[:-1]
    in_dim = x.shape[-1]
    out_dim = weights[-1].shape[1]
    assert weights[0].shape[0] == in_dim

    x2 = x.reshape(-1, in_dim)
    M = x2.shape[0]

    if M < max(min_pallas_rows, 16):
        # Small-M fast path: grid=(1,) Pallas dispatch is pure overhead; XLA
        # fusion is as fast or faster here (also covers M < one 16-row tile).
        h = x2
        for k, (w, b) in enumerate(zip(weights, biases)):
            h = h @ w + b
            if k < n_layers - 1:
                h = jnp.maximum(h, 0.0)
        y = h.reshape(*lead, out_dim)
        return y[..., 0] if squeeze_out else y

    out_pad = padded_weights[-1].shape[1]     # 128-lane-padded output width
    tm = _choose_tm(M, tm_max)
    grid = (pl.cdiv(M, tm),)                  # partial tail tile is masked

    # x is the only streaming input; weights/biases have constant block indices
    # and stay resident in VMEM across the whole row grid (~0.2 MiB here).
    # TODO(synk): for hidden dims >~1024 on v7x (64 MiB VMEM) switch to a
    # per-layer K-tiled matmul path (or pl.Buffered(1) on the weight specs);
    # if xprof shows exposed x DMA at large M, add pl.Buffered(3) on x only.
    in_specs = [pl.BlockSpec((tm, in_dim), lambda i: (i, 0))]
    args = [x2]
    for wp, bp in zip(padded_weights, padded_biases):
        args += [wp, bp]
        in_specs.append(pl.BlockSpec(wp.shape, lambda i: (0, 0)))
        in_specs.append(pl.BlockSpec(bp.shape, lambda i: (0, 0)))

    out = pl.pallas_call(
        _make_mlp_kernel(n_layers, compute_dtype),
        out_shape=jax.ShapeDtypeStruct((M, out_pad), compute_dtype),
        grid=grid,
        in_specs=in_specs,
        out_specs=pl.BlockSpec((tm, out_pad), lambda i: (i, 0)),
        compiler_params=pltpu.CompilerParams(
            dimension_semantics=("parallel",),      # megacore-friendly on v7x
            vmem_limit_bytes=_vmem_limit_bytes(),
        ),
    )(*args)

    # Slice off lane padding and cast the tiny result back to the input dtype.
    y = out[:, :out_dim].astype(orig_dtype).reshape(*lead, out_dim)
    return y[..., 0] if squeeze_out else y


# ----------------------------- params + reference --------------------------- #

def init_regularnet_params(key, input_dim, output_dim, layers=(32, 32, 64, 64)):
    """Mimics nn.Linear default init; returns (weights, biases, squeeze_out)."""
    squeeze_out = False
    if output_dim == 0:
        output_dim = 1
        squeeze_out = True
    dims = (input_dim,) + tuple(layers) + (output_dim,)
    weights, biases = [], []
    for i, (din, dout) in enumerate(zip(dims[:-1], dims[1:])):
        kw, kb = jax.random.split(jax.random.fold_in(key, i))
        bound = 1.0 / (din ** 0.5)
        weights.append(jax.random.uniform(kw, (din, dout), jnp.float32, -bound, bound))
        biases.append(jax.random.uniform(kb, (dout,), jnp.float32, -bound, bound))
    return weights, biases, squeeze_out


def reference_forward(x, weights, biases, squeeze_out):
    """Pure-JAX f32 reference matching the PyTorch module semantics."""
    h = x
    n = len(weights)
    for i, (w, b) in enumerate(zip(weights, biases)):
        h = h @ w + b
        if i < n - 1:
            h = jnp.maximum(h, 0.0)
    if squeeze_out:
        h = h[..., 0]
    return h


# ----------------------------------- main ------------------------------------ #

if __name__ == "__main__":
    input_dim, output_dim, layers = 4, 3, (32, 32, 64, 64)

    key = jax.random.PRNGKey(0)
    kx1, kx2, kp = jax.random.split(key, 3)

    weights, biases, squeeze_out = init_regularnet_params(kp, input_dim,
                                                          output_dim, layers)
    pw, pb = pad_params_for_pallas(weights, biases)   # padded/cast ONCE

    fwd = jax.jit(regularnet_forward,
                  static_argnames=("squeeze_out", "compute_dtype",
                                   "tm_max", "min_pallas_rows"))

    # 1) Small shape through the fused Pallas kernel (grid=(1,), tm=16).
    x_small = jax.random.normal(kx1, (2, 8, input_dim), jnp.float32)
    out_small = jax.block_until_ready(
        fwd(x_small, weights, biases, pw, pb,
            squeeze_out=squeeze_out, min_pallas_rows=0))
    ref_small = reference_forward(x_small, weights, biases, squeeze_out)
    assert out_small.shape == (2, 8, output_dim), out_small.shape
    err1 = float(jnp.max(jnp.abs(out_small - ref_small)))
    assert jnp.allclose(out_small, ref_small, atol=3e-2, rtol=3e-2), err1

    # 2) Larger row count: exercises grid >= 2 steps (v7x megacore split), row
    #    tiling, and the masked partial tail tile (M=1200 not a multiple of tm).
    x_big = jax.random.normal(kx2, (4, 300, input_dim), jnp.float32)
    out_big = jax.block_until_ready(
        fwd(x_big, weights, biases, pw, pb, squeeze_out=squeeze_out))
    ref_big = reference_forward(x_big, weights, biases, squeeze_out)
    assert out_big.shape == (4, 300, output_dim), out_big.shape
    err2 = float(jnp.max(jnp.abs(out_big - ref_big)))
    assert jnp.allclose(out_big, ref_big, atol=3e-2, rtol=3e-2), err2

    # 3) Default small-M fast path (plain XLA chain) + squeeze_out semantics.
    w_sq, b_sq, sq = init_regularnet_params(kp, input_dim, 0, layers)
    pw_sq, pb_sq = pad_params_for_pallas(w_sq, b_sq)
    out_sq = jax.block_until_ready(
        fwd(x_small, w_sq, b_sq, pw_sq, pb_sq, squeeze_out=sq))
    ref_sq = reference_forward(x_small, w_sq, b_sq, sq)
    assert out_sq.shape == (2, 8), out_sq.shape
    assert jnp.allclose(out_sq, ref_sq, atol=1e-4, rtol=1e-4)

    print("KERNEL_OK")
</pallas_src>

<mosaic_0001>
module attributes {stable_mosaic.version = 11 : i64} {
  func.func @kernel(%arg0: i32, %arg1: memref<16x4xf32, #tpu.memory_space<vmem>>, %arg2: memref<4x128xbf16, #tpu.memory_space<vmem>>, %arg3: memref<1x128xf32, #tpu.memory_space<vmem>>, %arg4: memref<128x128xbf16, #tpu.memory_space<vmem>>, %arg5: memref<1x128xf32, #tpu.memory_space<vmem>>, %arg6: memref<128x128xbf16, #tpu.memory_space<vmem>>, %arg7: memref<1x128xf32, #tpu.memory_space<vmem>>, %arg8: memref<128x128xbf16, #tpu.memory_space<vmem>>, %arg9: memref<1x128xf32, #tpu.memory_space<vmem>>, %arg10: memref<128x128xbf16, #tpu.memory_space<vmem>>, %arg11: memref<1x128xf32, #tpu.memory_space<vmem>>, %arg12: memref<16x128xbf16, #tpu.memory_space<vmem>>) attributes {dimension_semantics = [#tpu.dimension_semantics<parallel>], iteration_bounds = array<i64: 1>, scalar_prefetch = 0 : i64, scratch_operands = 0 : i64, tpu.core_type = #tpu.core_type<tc>, window_params = [{transform_indices = @transform_0, window_bounds = array<i64: 16, 4>}, {pipeline_mode = #tpu.pipeline_mode<synchronous>, transform_indices = @transform_1, window_bounds = array<i64: 4, 128>}, {pipeline_mode = #tpu.pipeline_mode<synchronous>, transform_indices = @transform_2, window_bounds = array<i64: 1, 128>}, {pipeline_mode = #tpu.pipeline_mode<synchronous>, transform_indices = @transform_3, window_bounds = array<i64: 128, 128>}, {pipeline_mode = #tpu.pipeline_mode<synchronous>, transform_indices = @transform_4, window_bounds = array<i64: 1, 128>}, {pipeline_mode = #tpu.pipeline_mode<synchronous>, transform_indices = @transform_5, window_bounds = array<i64: 128, 128>}, {pipeline_mode = #tpu.pipeline_mode<synchronous>, transform_indices = @transform_6, window_bounds = array<i64: 1, 128>}, {pipeline_mode = #tpu.pipeline_mode<synchronous>, transform_indices = @transform_7, window_bounds = array<i64: 128, 128>}, {pipeline_mode = #tpu.pipeline_mode<synchronous>, transform_indices = @transform_8, window_bounds = array<i64: 1, 128>}, {pipeline_mode = #tpu.pipeline_mode<synchronous>, transform_indices = @transform_9, window_bounds = array<i64: 128, 128>}, {pipeline_mode = #tpu.pipeline_mode<synchronous>, transform_indices = @transform_10, window_bounds = array<i64: 1, 128>}, {transform_indices = @transform_11, window_bounds = array<i64: 16, 128>}]} {
    %c0 = arith.constant 0 : index
    %c0_0 = arith.constant 0 : index
    %0 = vector.load %arg1[%c0, %c0_0] : memref<16x4xf32, #tpu.memory_space<vmem>>, vector<16x4xf32>
    %1 = arith.truncf %0 : vector<16x4xf32> to vector<16x4xbf16>
    %c0_1 = arith.constant 0 : index
    %c0_2 = arith.constant 0 : index
    %2 = vector.load %arg2[%c0_1, %c0_2] : memref<4x128xbf16, #tpu.memory_space<vmem>>, vector<4x128xbf16>
    %cst = arith.constant dense<0.000000e+00> : vector<16x128xf32>
    %3 = tpu.matmul %1, %2, %cst {dimension_numbers = #tpu.dot_dimension_numbers<[1], [0], [0], [1], [0, 0, 1, 1], [], []>} : vector<16x4xbf16>, vector<4x128xbf16>, vector<16x128xf32> -> vector<16x128xf32>
    %c0_3 = arith.constant 0 : index
    %c0_4 = arith.constant 0 : index
    %4 = vector.load %arg3[%c0_3, %c0_4] : memref<1x128xf32, #tpu.memory_space<vmem>>, vector<1x128xf32>
    %5 = vector.broadcast %4 : vector<1x128xf32> to vector<16x128xf32>
    %6 = arith.addf %3, %5 : vector<16x128xf32>
    %cst_5 = arith.constant 0.000000e+00 : f32
    %7 = vector.broadcast %cst_5 : f32 to vector<16x128xf32>
    %8 = arith.maximumf %6, %7 : vector<16x128xf32>
    %9 = arith.truncf %8 : vector<16x128xf32> to vector<16x128xbf16>
    %c0_6 = arith.constant 0 : index
    %c0_7 = arith.constant 0 : index
    %10 = vector.load %arg4[%c0_6, %c0_7] : memref<128x128xbf16, #tpu.memory_space<vmem>>, vector<128x128xbf16>
    %cst_8 = arith.constant dense<0.000000e+00> : vector<16x128xf32>
    %11 = tpu.matmul %9, %10, %cst_8 {dimension_numbers = #tpu.dot_dimension_numbers<[1], [0], [0], [1], [0, 0, 1, 1], [], []>} : vector<16x128xbf16>, vector<128x128xbf16>, vector<16x128xf32> -> vector<16x128xf32>
    %c0_9 = arith.constant 0 : index
    %c0_10 = arith.constant 0 : index
    %12 = vector.load %arg5[%c0_9, %c0_10] : memref<1x128xf32, #tpu.memory_space<vmem>>, vector<1x128xf32>
    %13 = vector.broadcast %12 : vector<1x128xf32> to vector<16x128xf32>
    %14 = arith.addf %11, %13 : vector<16x128xf32>
    %cst_11 = arith.constant 0.000000e+00 : f32
    %15 = vector.broadcast %cst_11 : f32 to vector<16x128xf32>
    %16 = arith.maximumf %14, %15 : vector<16x128xf32>
    %17 = arith.truncf %16 : vector<16x128xf32> to vector<16x128xbf16>
    %c0_12 = arith.constant 0 : index
    %c0_13 = arith.constant 0 : index
    %18 = vector.load %arg6[%c0_12, %c0_13] : memref<128x128xbf16, #tpu.memory_space<vmem>>, vector<128x128xbf16>
    %cst_14 = arith.constant dense<0.000000e+00> : vector<16x128xf32>
    %19 = tpu.matmul %17, %18, %cst_14 {dimension_numbers = #tpu.dot_dimension_numbers<[1], [0], [0], [1], [0, 0, 1, 1], [], []>} : vector<16x128xbf16>, vector<128x128xbf16>, vector<16x128xf32> -> vector<16x128xf32>
    %c0_15 = arith.constant 0 : index
    %c0_16 = arith.constant 0 : index
    %20 = vector.load %arg7[%c0_15, %c0_16] : memref<1x128xf32, #tpu.memory_space<vmem>>, vector<1x128xf32>
    %21 = vector.broadcast %20 : vector<1x128xf32> to vector<16x128xf32>
    %22 = arith.addf %19, %21 : vector<16x128xf32>
    %cst_17 = arith.constant 0.000000e+00 : f32
    %23 = vector.broadcast %cst_17 : f32 to vector<16x128xf32>
    %24 = arith.maximumf %22, %23 : vector<16x128xf32>
    %25 = arith.truncf %24 : vector<16x128xf32> to vector<16x128xbf16>
    %c0_18 = arith.constant 0 : index
    %c0_19 = arith.constant 0 : index
    %26 = vector.load %arg8[%c0_18, %c0_19] : memref<128x128xbf16, #tpu.memory_space<vmem>>, vector<128x128xbf16>
    %cst_20 = arith.constant dense<0.000000e+00> : vector<16x128xf32>
    %27 = tpu.matmul %25, %26, %cst_20 {dimension_numbers = #tpu.dot_dimension_numbers<[1], [0], [0], [1], [0, 0, 1, 1], [], []>} : vector<16x128xbf16>, vector<128x128xbf16>, vector<16x128xf32> -> vector<16x128xf32>
    %c0_21 = arith.constant 0 : index
    %c0_22 = arith.constant 0 : index
    %28 = vector.load %arg9[%c0_21, %c0_22] : memref<1x128xf32, #tpu.memory_space<vmem>>, vector<1x128xf32>
    %29 = vector.broadcast %28 : vector<1x128xf32> to vector<16x128xf32>
    %30 = arith.addf %27, %29 : vector<16x128xf32>
    %cst_23 = arith.constant 0.000000e+00 : f32
    %31 = vector.broadcast %cst_23 : f32 to vector<16x128xf32>
    %32 = arith.maximumf %30, %31 : vector<16x128xf32>
    %33 = arith.truncf %32 : vector<16x128xf32> to vector<16x128xbf16>
    %c0_24 = arith.constant 0 : index
    %c0_25 = arith.constant 0 : index
    %34 = vector.load %arg10[%c0_24, %c0_25] : memref<128x128xbf16, #tpu.memory_space<vmem>>, vector<128x128xbf16>
    %cst_26 = arith.constant dense<0.000000e+00> : vector<16x128xf32>
    %35 = tpu.matmul %33, %34, %cst_26 {dimension_numbers = #tpu.dot_dimension_numbers<[1], [0], [0], [1], [0, 0, 1, 1], [], []>} : vector<16x128xbf16>, vector<128x128xbf16>, vector<16x128xf32> -> vector<16x128xf32>
    %c0_27 = arith.constant 0 : index
    %c0_28 = arith.constant 0 : index
    %36 = vector.load %arg11[%c0_27, %c0_28] : memref<1x128xf32, #tpu.memory_space<vmem>>, vector<1x128xf32>
    %37 = vector.broadcast %36 : vector<1x128xf32> to vector<16x128xf32>
    %38 = arith.addf %35, %37 : vector<16x128xf32>
    %39 = arith.truncf %38 : vector<16x128xf32> to vector<16x128xbf16>
    %c0_29 = arith.constant 0 : index
    %c0_30 = arith.constant 0 : index
    %40 = vector.load %arg12[%c0_29, %c0_30] : memref<16x128xbf16, #tpu.memory_space<vmem>>, vector<16x128xbf16>
    tpu.vector_store %arg12[%c0_29, %c0_30], %39 {strides = array<i32>} : memref<16x128xbf16, #tpu.memory_space<vmem>>, vector<16x128xbf16>,
    return
  }
  func.func @transform_0(%arg0: i32) -> (i32, i32) {
    %c0_i32 = arith.constant 0 : i32
    %c0_i32_0 = arith.constant 0 : i32
    return %arg0, %c0_i32 : i32, i32
  }
  func.func @transform_1(%arg0: i32) -> (i32, i32) {
    %c0_i32 = arith.constant 0 : i32
    %c0_i32_0 = arith.constant 0 : i32
    %c0_i32_1 = arith.constant 0 : i32
    return %c0_i32, %c0_i32_0 : i32, i32
  }
  func.func @transform_2(%arg0: i32) -> (i32, i32) {
    %c0_i32 = arith.constant 0 : i32
    %c0_i32_0 = arith.constant 0 : i32
    %c0_i32_1 = arith.constant 0 : i32
    return %c0_i32, %c0_i32_0 : i32, i32
  }
  func.func @transform_3(%arg0: i32) -> (i32, i32) {
    %c0_i32 = arith.constant 0 : i32
    %c0_i32_0 = arith.constant 0 : i32
    %c0_i32_1 = arith.constant 0 : i32
    return %c0_i32, %c0_i32_0 : i32, i32
  }
  func.func @transform_4(%arg0: i32) -> (i32, i32) {
    %c0_i32 = arith.constant 0 : i32
    %c0_i32_0 = arith.constant 0 : i32
    %c0_i32_1 = arith.constant 0 : i32
    return %c0_i32, %c0_i32_0 : i32, i32
  }
  func.func @transform_5(%arg0: i32) -> (i32, i32) {
    %c0_i32 = arith.constant 0 : i32
    %c0_i32_0 = arith.constant 0 : i32
    %c0_i32_1 = arith.constant 0 : i32
    return %c0_i32, %c0_i32_0 : i32, i32
  }
  func.func @transform_6(%arg0: i32) -> (i32, i32) {
    %c0_i32 = arith.constant 0 : i32
    %c0_i32_0 = arith.constant 0 : i32
    %c0_i32_1 = arith.constant 0 : i32
    return %c0_i32, %c0_i32_0 : i32, i32
  }
  func.func @transform_7(%arg0: i32) -> (i32, i32) {
    %c0_i32 = arith.constant 0 : i32
    %c0_i32_0 = arith.constant 0 : i32
    %c0_i32_1 = arith.constant 0 : i32
    return %c0_i32, %c0_i32_0 : i32, i32
  }
  func.func @transform_8(%arg0: i32) -> (i32, i32) {
    %c0_i32 = arith.constant 0 : i32
    %c0_i32_0 = arith.constant 0 : i32
    %c0_i32_1 = arith.constant 0 : i32
    return %c0_i32, %c0_i32_0 : i32, i32
  }
  func.func @transform_9(%arg0: i32) -> (i32, i32) {
    %c0_i32 = arith.constant 0 : i32
    %c0_i32_0 = arith.constant 0 : i32
    %c0_i32_1 = arith.constant 0 : i32
    return %c0_i32, %c0_i32_0 : i32, i32
  }
  func.func @transform_10(%arg0: i32) -> (i32, i32) {
    %c0_i32 = arith.constant 0 : i32
    %c0_i32_0 = arith.constant 0 : i32
    %c0_i32_1 = arith.constant 0 : i32
    return %c0_i32, %c0_i32_0 : i32, i32
  }
  func.func @transform_11(%arg0: i32) -> (i32, i32) {
    %c0_i32 = arith.constant 0 : i32
    %c0_i32_0 = arith.constant 0 : i32
    return %arg0, %c0_i32 : i32, i32
  }
}

</mosaic_0001>

<bundles_post_ra>
// kernel: regularnet_forward.1
= control target key start
LH: loop header
LB: loop body
LE: loop exit
PB: predicated region body
PF: predicated region fallthrough
CT: control target
= control target key end

     0   :  { %16 = vsyncpa [#allocation3], 0  ;;  %s867_s0 = inlined_call_operand.vmem [shape: f32[16,4], index: 0, kind: input, shape index: {}]   ;;  %s868_s1 = inlined_call_operand.vmem [shape: bf16[4,128], index: 1, kind: input, shape index: {}]   ;;  %s869_s2 = inlined_call_operand.vmem [shape: f32[1,128], index: 2, kind: input, shape index: {}]   ;;  %s870_s3 = inlined_call_operand.hbm [shape: bf16[128,128], index: 3, kind: input, shape index: {}]   ;;  %s871_s4 = inlined_call_operand.vmem [shape: f32[1,128], index: 4, kind: input, shape index: {}]   ;;  %s872_s5 = inlined_call_operand.hbm [shape: bf16[128,128], index: 5, kind: input, shape index: {}]   ;;  %s873_s6 = inlined_call_operand.vmem [shape: f32[1,128], index: 6, kind: input, shape index: {}]   ;;  %s874_s7 = inlined_call_operand.hbm [shape: bf16[128,128], index: 7, kind: input, shape index: {}]   ;;  %s875_s8 = inlined_call_operand.vmem [shape: f32[1,128], index: 8, kind: input, shape index: {}]   ;;  %s876_s9 = inlined_call_operand.hbm [shape: bf16[128,128], index: 9, kind: input, shape index: {}]   ;;  %s877_s10 = inlined_call_operand.vmem [shape: f32[1,128], index: 10, kind: input, shape index: {}]   ;;  %s878_s11 = inlined_call_operand.vmem [shape: bf16[16,128], index: 11, kind: output, shape index: {}]  }
   0x1   :  { %17 = vsyncpa [#allocation5], 0 }
   0x2   :  { %18 = vsyncpa [#allocation8], 0  ;;  %s44_s19 = sshll.u32 %s872_s5, 4  ;;  %s762_s20 = smov [#allocation4]   ;;  %s45_s19 = int_to_ptr.hbm [resolvable:$true] %s44_s19 }
   0x3   :  { %s46_s21 = sshll.u32 %s762_s20, 4  ;;  %s29_s24 = sshll.u32 %s870_s3, 4  ;;  %s47_s21 = int_to_ptr.vmem [resolvable:$true] %s46_s21  ;;  %s30_s24 = int_to_ptr.hbm [resolvable:$true] %s29_s24 }
   0x4   :  { %s763_s25 = smov 64   ;;  %s764_s26 = smov 4  }
   0x5   :  { %52 = dma.hbm_to_vmem [thread:$0]  %s45_s19, 1024, %s47_s21, [#allocation5], %s763_s25, %s763_s25, %s764_s26  }
   0x6   :  { %s765_s27 = smov [#allocation2]   ;;  %s59_s12 = sshll.u32 %s874_s7, 4  ;;  %s60_s12 = int_to_ptr.hbm [resolvable:$true] %s59_s12 }
   0x7   :  { %s31_s28 = sshll.u32 %s765_s27, 4  ;;  %s74_s14 = sshll.u32 %s876_s9, 4  ;;  %s32_s28 = int_to_ptr.vmem [resolvable:$true] %s31_s28  ;;  %s75_s14 = int_to_ptr.hbm [resolvable:$true] %s74_s14 }
   0x8   :  { %37 = dma.hbm_to_vmem [thread:$0]  %s30_s24, 1024, %s32_s28, [#allocation3], %s763_s25, %s763_s25, %s764_s26  }
   0x9   :  { %s766_s15 = smov [#allocation6]   ;;  %s767_s3 = smov [#allocation7]  }
   0xa   :  { %s61_s16 = sshll.u32 %s766_s15, 4  ;;  %s76_s17 = sshll.u32 %s767_s3, 4  ;;  %s62_s16 = int_to_ptr.vmem [resolvable:$true] %s61_s16  ;;  %s77_s17 = int_to_ptr.vmem [resolvable:$true] %s76_s17 }
   0xb   :  { %67 = dma.hbm_to_vmem [thread:$0]  %s60_s12, 1024, %s62_s16, [#allocation5], %s763_s25, %s763_s25, %s764_s26  }
   0xc   :  { %82 = dma.hbm_to_vmem [thread:$0]  %s75_s14, 1024, %s77_s17, [#allocation8], %s763_s25, %s763_s25, %s764_s26  }
   0xd   :  { %756 = dma.done.wait [#allocation3], 1024  }
   0xe   :  { %757 = vsyncadd [#allocation3], 4294966272 }
   0xf   :  { %758 = dma.done.wait [#allocation5], 2048  }
  0x10   :  { %759 = vsyncadd [#allocation5], 4294965248 }
  0x11   :  { %760 = dma.done.wait [#allocation8], 1024  }
  0x12   :  { %761 = vsyncadd [#allocation8], 4294966272  ;;  %vm114_vm0 = vcmask 1041408   ;;  %v105_v0 = vld [vmem:[%s868_s1] sm:$0x3]  ;;  %v103_v2 = vld [vmem:[%s867_s0 + $0x8] sm:$0xff] }
  0x13   :  { %v102_v1 = vld [vmem:[%s867_s0] sm:$0xff]  ;;  %v116_v3 = vsel %vm114_vm0, %v105_v0, 0  ;;  %v619_v5 = vld [vmem:[#allocation2 + $0x38] sm:$0xff]  ;;  %vm110_vm1 = vcmask 31744   ;;  %v618_v6 = vld [vmem:[#allocation2 + $0x30] sm:$0xff] }
  0x14   :  { %v104_v4 = vpack.c.bf16 %v103_v2, %v102_v1  ;;  %125 = vmatpush.bf16.msra.mxu0 %v116_v3  ;;  %203 = vmatpush.bf16.msra.mxu1 %v619_v5  ;;  %v617_v7 = vld [vmem:[#allocation2 + $0x28] sm:$0xff]  ;;  %v616_v8 = vld [vmem:[#allocation2 + $0x20] sm:$0xff]  ;;  %v615_v9 = vld [vmem:[#allocation2 + $0x18] sm:$0xff] }
  0x15   :  { %v614_v10 = vld [vmem:[#allocation2 + $0x10] sm:$0xff]  ;;  %v613_v11 = vld [vmem:[#allocation2 + $0x8] sm:$0xff]  ;;  %v612_v12 = vld [vmem:[#allocation2] sm:$0xff] }
  0x16   :  { %v627_v13 = vld [vmem:[#allocation4 + $0x38] sm:$0xff]  ;;  %v626_v14 = vld [vmem:[#allocation4 + $0x30] sm:$0xff]  ;;  %v625_v15 = vld [vmem:[#allocation4 + $0x28] sm:$0xff] }
  0x17   :  { %483 = vmatmul.msk.bf16.vlgmr.msra.gmra.mxu0 %vm110_vm1, %v104_v4  ;;  %288 = vmatpush.bf16.msra.mxu2 %v627_v13  ;;  %v624_v16 = vld [vmem:[#allocation4 + $0x20] sm:$0xff]  ;;  %v623_v25 = vld [vmem:[#allocation4 + $0x18] sm:$0xff]  ;;  %v622_v26 = vld [vmem:[#allocation4 + $0x10] sm:$0xff] }
  0x18   :  { %204 = vmatpush.bf16.msra.mxu1 %v618_v6  ;;  %v655_v18 = vld [vmem:[%s869_s2] ss:$0 sm:$0xff]  ;;  %v621_v27 = vld [vmem:[#allocation4 + $0x8] sm:$0xff]  ;;  %v635_v29 = vld [vmem:[#allocation6 + $0x38] sm:$0xff] }
  0x19   :  { %v620_v28 = vld [vmem:[#allocation4] sm:$0xff]  ;;  %373 = vmatpush.bf16.msra.mxu3 %v635_v29  ;;  %v634_v30 = vld [vmem:[#allocation6 + $0x30] sm:$0xff]  ;;  %v633_v31 = vld [vmem:[#allocation6 + $0x28] sm:$0xff] }
  0x1a   :  { %v632_v32 = vld [vmem:[#allocation6 + $0x20] sm:$0xff]  ;;  %v631_v41 = vld [vmem:[#allocation6 + $0x18] sm:$0xff]  ;;  %v630_v42 = vld [vmem:[#allocation6 + $0x10] sm:$0xff] }
  0x1b   :  { %289 = vmatpush.bf16.msra.mxu2 %v626_v14  ;;  %v656_v34 = vld [vmem:[%s871_s4] ss:$0 sm:$0xff]  ;;  %v629_v43 = vld [vmem:[#allocation6 + $0x8] sm:$0xff]  ;;  %v643_v45 = vld [vmem:[#allocation7 + $0x38] sm:$0xff] }
  0x1c   :  { %205 = vmatpush.bf16.msra.mxu1 %v617_v7  ;;  %v628_v44 = vld [vmem:[#allocation6] sm:$0xff]  ;;  %458 = vmatpush.bf16.msrb.mxu0 %v643_v45  ;;  %v642_v46 = vld [vmem:[#allocation7 + $0x30] sm:$0xff]  ;;  %v641_v47 = vld [vmem:[#allocation7 + $0x28] sm:$0xff] }
  0x1d   :  { %374 = vmatpush.bf16.msra.mxu3 %v634_v30  ;;  %v640_v48 = vld [vmem:[#allocation7 + $0x20] sm:$0xff]  ;;  %v639_v57 = vld [vmem:[#allocation7 + $0x18] sm:$0xff]  ;;  %v638_v58 = vld [vmem:[#allocation7 + $0x10] sm:$0xff] }
  0x1e   :  { %v657_v50 = vld [vmem:[%s873_s6] ss:$0 sm:$0xff]  ;;  %v637_v59 = vld [vmem:[#allocation7 + $0x8] sm:$0xff] }
  0x1f   :  { %290 = vmatpush.bf16.msra.mxu2 %v625_v15  ;;  %v636_v60 = vld [vmem:[#allocation7] sm:$0xff] }
  0x20   :  { %206 = vmatpush.bf16.msra.mxu1 %v616_v8  ;;  %459 = vmatpush.bf16.msrb.mxu0 %v642_v46  ;;  %v658_v62 = vld [vmem:[%s875_s8] ss:$0 sm:$0xff] }
  0x21   :  { %375 = vmatpush.bf16.msra.mxu3 %v633_v31  ;;  %v659_v6 = vld [vmem:[%s877_s10] ss:$0 sm:$0xff] }
  0x23   :  { %291 = vmatpush.bf16.msra.mxu2 %v624_v16 }
  0x24   :  { %207 = vmatpush.bf16.msra.mxu1 %v615_v9  ;;  %460 = vmatpush.bf16.msrb.mxu0 %v641_v47 }
  0x25   :  { %376 = vmatpush.bf16.msra.mxu3 %v632_v32 }
  0x27   :  { %292 = vmatpush.bf16.msra.mxu2 %v623_v25 }
  0x28   :  { %208 = vmatpush.bf16.msra.mxu1 %v614_v10  ;;  %461 = vmatpush.bf16.msrb.mxu0 %v640_v48 }
  0x29   :  { %377 = vmatpush.bf16.msra.mxu3 %v631_v41 }
  0x2b   :  { %293 = vmatpush.bf16.msra.mxu2 %v622_v26 }
  0x2c   :  { %209 = vmatpush.bf16.msra.mxu1 %v613_v11  ;;  %462 = vmatpush.bf16.msrb.mxu0 %v639_v57 }
  0x2d   :  { %378 = vmatpush.bf16.msra.mxu3 %v630_v42 }
  0x2f   :  { %294 = vmatpush.bf16.msra.mxu2 %v621_v27 }
  0x30   :  { %210 = vmatpush.bf16.msra.mxu1 %v612_v12  ;;  %463 = vmatpush.bf16.msrb.mxu0 %v638_v58 }
  0x31   :  { %379 = vmatpush.bf16.msra.mxu3 %v629_v43 }
  0x33   :  { %295 = vmatpush.bf16.msra.mxu2 %v620_v28 }
  0x34   :  { %464 = vmatpush.bf16.msrb.mxu0 %v637_v59 }
  0x35   :  { %380 = vmatpush.bf16.msra.mxu3 %v628_v44 }
  0x38   :  { %465 = vmatpush.bf16.msrb.mxu0 %v636_v60 }
  0x94   :  { %v127_v17 = vpop.f32.mrf.mxu0 }
  0x95   :  { %v128_v19 = vadd.f32 %v655_v18, %v127_v17 }
  0x97   :  { %v132_v22 = vmax.f32 %v128_v19, 0.0 }
  0x9c   :  { %v129_v20 = vpop.f32.mrf.mxu0 }
  0x9d   :  { %v130_v21 = vadd.f32 %v655_v18, %v129_v20 }
  0x9f   :  { %v133_v23 = vmax.f32 %v130_v21, 0.0 }
  0xa1   :  { %v134_v24 = vpack.c.bf16 %v133_v23, %v132_v22 }
  0xa3   :  { %211 = vmatmul.bf16.vlgmr.msra.gmra.mxu1 %v134_v24 }
 0x120   :  { %v212_v33 = vpop.f32.mrf.mxu1 }
 0x121   :  { %v213_v35 = vadd.f32 %v656_v34, %v212_v33 }
 0x123   :  { %v217_v38 = vmax.f32 %v213_v35, 0.0 }
 0x128   :  { %v214_v36 = vpop.f32.mrf.mxu1 }
 0x129   :  { %v215_v37 = vadd.f32 %v656_v34, %v214_v36 }
 0x12b   :  { %v218_v39 = vmax.f32 %v215_v37, 0.0 }
 0x12d   :  { %v219_v40 = vpack.c.bf16 %v218_v39, %v217_v38 }
 0x12f   :  { %296 = vmatmul.bf16.vlgmr.msra.gmra.mxu2 %v219_v40 }
 0x1b2   :  { %v297_v49 = vpop.f32.mrf.mxu2 }
 0x1b3   :  { %v298_v51 = vadd.f32 %v657_v50, %v297_v49 }
 0x1b5   :  { %v302_v54 = vmax.f32 %v298_v51, 0.0 }
 0x1ba   :  { %v299_v52 = vpop.f32.mrf.mxu2 }
 0x1bb   :  { %v300_v53 = vadd.f32 %v657_v50, %v299_v52 }
 0x1bd   :  { %v303_v55 = vmax.f32 %v300_v53, 0.0 }
 0x1bf   :  { %v304_v56 = vpack.c.bf16 %v303_v55, %v302_v54 }
 0x1c1   :  { %381 = vmatmul.bf16.vlgmr.msra.gmra.mxu3 %v304_v56 }
 0x244   :  { %v382_v61 = vpop.f32.mrf.mxu3 }
 0x245   :  { %v383_v63 = vadd.f32 %v658_v62, %v382_v61 }
 0x247   :  { %v387_v2 = vmax.f32 %v383_v63, 0.0 }
 0x24c   :  { %v384_v0 = vpop.f32.mrf.mxu3 }
 0x24d   :  { %v385_v1 = vadd.f32 %v658_v62, %v384_v0 }
 0x24f   :  { %v388_v3 = vmax.f32 %v385_v1, 0.0 }
 0x251   :  { %v389_v4 = vpack.c.bf16 %v388_v3, %v387_v2 }
 0x253   :  { %466 = vmatmul.bf16.vlgmr.msrb.gmra.mxu0 %v389_v4 }
 0x2d0   :  { %v467_v5 = vpop.f32.mrf.mxu0 }
 0x2d1   :  { %v468_v8 = vadd.f32 %v659_v6, %v467_v5 }
 0x2d8   :  { %v469_v7 = vpop.f32.mrf.mxu0 }
 0x2d9   :  { %v470_v9 = vadd.f32 %v659_v6, %v469_v7 }
 0x2db   :  { %v647_v10 = vpack.c.bf16 %v470_v9, %v468_v8 }
 0x2dd   :  { %648 = vst [vmem:[%s878_s11] sm:$0xff] %v647_v10  }
 0x2de   :  { %480 = vsyncpa [#allocation3], 1 }
 0x2df   :  { %481 = vsyncpa [#allocation5], 1 }
 0x2e0   :  { %482 = vsyncpa [#allocation8], 1 }

</bundles_post_ra>
